<compile_context>
chip_gen: v7x
topology: tpu7x:2x2x1
jax: 0.10.0
libtpu: 0.0.40
codegen_flags: <defaults>
</compile_context>

<pallas_src>
import functools
import math

import jax
import jax.numpy as jnp
from jax.experimental import pallas as pl
from jax.experimental.pallas import tpu as pltpu


# ----------------------------------------------------------------------------
# helpers
# ----------------------------------------------------------------------------
def _pick_row_tile(m):
    for t in (512, 256, 128, 64, 32, 16, 8):
        if m % t == 0:
            return t
    return m


def _pick_head_group(num_heads, head_dim):
    # Smallest head group whose context slab (G*head_dim lanes) is a multiple
    # of 128 (lane-dense stores, e.g. head *pairs* at head_dim=64); otherwise
    # fall back to all heads, which makes the output block the full hidden dim.
    for g in range(1, num_heads + 1):
        if num_heads % g == 0 and (g * head_dim) % 128 == 0:
            return g
    return num_heads


def _vmem_limit(nbytes):
    # 1.5x the estimated per-step footprint, floored at the 32 MiB default and
    # capped at v7x's 64 MiB physical VMEM.
    return int(max(32 * 1024 * 1024, min(int(nbytes * 1.5), 64 * 1024 * 1024)))


# ----------------------------------------------------------------------------
# Stage 1: fused QKV projection  (x @ W_qkv + b_qkv)
# ----------------------------------------------------------------------------
def _qkv_proj_kernel(x_ref, w_ref, b_ref, o_ref):
    # x_ref: (tm, H)  w_ref: (H, 3H)  b_ref: (1, 3H)  o_ref: (tm, 3H)
    acc = jnp.dot(x_ref[...], w_ref[...], preferred_element_type=jnp.float32)
    acc = acc + b_ref[...].astype(jnp.float32)
    o_ref[...] = acc.astype(o_ref.dtype)


def _qkv_projection(x2d, w, bias, out_dtype):
    m, h = x2d.shape
    n = w.shape[1]
    tm = _pick_row_tile(m)
    cd = jnp.dtype(x2d.dtype).itemsize
    od = jnp.dtype(out_dtype).itemsize
    est = (2 * tm * h * cd        # x tile (double buffered)
           + 2 * h * n * cd       # weight (default double buffered, resident)
           + 2 * n * 4            # bias
           + 2 * tm * n * od      # output tile (double buffered)
           + tm * n * 4)          # f32 accumulator
    return pl.pallas_call(
        _qkv_proj_kernel,
        out_shape=jax.ShapeDtypeStruct((m, n), out_dtype),
        grid_spec=pltpu.PrefetchScalarGridSpec(
            num_scalar_prefetch=0,
            grid=(m // tm,),
            in_specs=[
                pl.BlockSpec((tm, h), lambda i: (i, 0)),
                # Constant index_map: weight/bias DMA'd once, stay resident.
                # TODO(synk): pipeline_mode=pl.Buffered(1) here would reclaim
                # the idle second weight buffer (halves weight VMEM).
                pl.BlockSpec((h, n), lambda i: (0, 0)),
                pl.BlockSpec((1, n), lambda i: (0, 0)),
            ],
            out_specs=pl.BlockSpec((tm, n), lambda i: (i, 0)),
        ),
        compiler_params=pltpu.CompilerParams(
            dimension_semantics=("parallel",),
            vmem_limit_bytes=_vmem_limit(est)),
    )(x2d, w, bias)


# ----------------------------------------------------------------------------
# Stage 2: per-(batch, head-group) attention
# ----------------------------------------------------------------------------
def _attn_kernel(q_ref, k_ref, v_ref, mask_ref, o_ref, *, head_dim,
                 approx_recip):
    # q/k/v_ref: (1, G, S, hd)   mask_ref: (1, 1, Sm, S), Sm in {1, S}
    # o_ref:     (1, S, G*hd)
    q = q_ref[0]
    k = k_ref[0]
    v = v_ref[0]
    g_heads = q.shape[0]

    # Fold both /hd**0.25 divides of the reference into one multiply on q.
    q = q * jnp.asarray(1.0 / math.sqrt(head_dim), dtype=q.dtype)

    # Batched-over-heads QK^T: contract the last (hd) dims directly -> no k.T.
    scores = jnp.einsum("gqd,gkd->gqk", q, k,
                        preferred_element_type=jnp.float32)          # (G,S,S)
    mask = mask_ref[0, 0].astype(jnp.float32)                        # (Sm,S)
    scores = scores + mask[None]

    # f32 softmax; normalisation via the EUP reciprocal instead of a divide.
    m = jnp.max(scores, axis=-1, keepdims=True)
    p = jnp.exp(scores - m)
    l = jnp.sum(p, axis=-1, keepdims=True)
    probs = p * pl.reciprocal(l, approx=approx_recip)

    # TODO(synk): attention-prob dropout is train-mode only; eval identity here.

    ctx = jnp.einsum("gqk,gkd->gqd", probs.astype(v.dtype), v,
                     preferred_element_type=jnp.float32)             # (G,S,hd)

    # Re-concatenate the group's heads along the lane dim and issue a single
    # lane-dense (S, G*hd) store (no per-head masked stores).
    out = jnp.concatenate([ctx[i] for i in range(g_heads)], axis=-1)
    o_ref[0] = out.astype(o_ref.dtype)


def bert_parallel_self_attention(hidden_states, attention_mask, w_qkv, b_qkv,
                                 num_attention_heads,
                                 compute_dtype=jnp.bfloat16):
    """hidden_states [B,S,H]; attention_mask additive, [B,1,S,S] or [B,1,1,S];
    w_qkv [H,3H] (x @ W + b layout, world_size=1); b_qkv [1,3H]."""
    b_, s_, h_ = hidden_states.shape
    nh = num_attention_heads
    assert h_ % nh == 0
    hd = h_ // nh

    # --- stage 1: QKV projection (bf16 operands, f32 accumulation) ---
    x2d = hidden_states.reshape(b_ * s_, h_).astype(compute_dtype)
    w = w_qkv.astype(compute_dtype)
    bias = b_qkv.reshape(1, 3 * h_).astype(jnp.float32)
    qkv2d = _qkv_projection(x2d, w, bias, compute_dtype)            # (B*S, 3H)

    # Layout plumbing in XLA (outside the kernels): columns are [q | k | v],
    # each head-major, so expose leading-batch per-head blocks for stage 2.
    qkv = qkv2d.reshape(b_, s_, 3, nh, hd).transpose(2, 0, 3, 1, 4)  # (3,B,nh,S,hd)
    q, k, v = qkv[0], qkv[1], qkv[2]

    # --- stage 2: attention over a (batch, head-group) parallel grid ---
    g = _pick_head_group(nh, hd)
    num_groups = nh // g
    sm = attention_mask.shape[2]       # S (dense additive) or 1 (key padding)

    cd = jnp.dtype(compute_dtype).itemsize
    od = jnp.dtype(hidden_states.dtype).itemsize
    est = (3 * 2 * g * s_ * hd * cd    # q/k/v blocks, double buffered
           + 2 * sm * s_ * 4           # mask block
           + 2 * s_ * g * hd * od      # output block
           + 2 * g * s_ * s_ * 4       # scores + probs (f32)
           + 2 * g * s_ * hd * 4)      # f32 context + slack
    # TODO(synk): for very long S, additionally tile the q/kv sequence dims
    # (flash-style online softmax) so the (G,S,S) scores never materialise.

    kernel = functools.partial(
        _attn_kernel, head_dim=hd,
        approx_recip=(jnp.dtype(compute_dtype) != jnp.dtype(jnp.float32)))

    return pl.pallas_call(
        kernel,
        out_shape=jax.ShapeDtypeStruct((b_, s_, h_), hidden_states.dtype),
        grid_spec=pltpu.PrefetchScalarGridSpec(
            num_scalar_prefetch=0,
            grid=(b_, num_groups),
            in_specs=[
                pl.BlockSpec((1, g, s_, hd), lambda bi, gi: (bi, gi, 0, 0)),
                pl.BlockSpec((1, g, s_, hd), lambda bi, gi: (bi, gi, 0, 0)),
                pl.BlockSpec((1, g, s_, hd), lambda bi, gi: (bi, gi, 0, 0)),
                pl.BlockSpec((1, 1, sm, s_), lambda bi, gi: (bi, 0, 0, 0)),
            ],
            out_specs=pl.BlockSpec((1, s_, g * hd),
                                   lambda bi, gi: (bi, 0, gi)),
        ),
        compiler_params=pltpu.CompilerParams(
            # Both axes are independent -> shardable across TensorCores (v7x).
            dimension_semantics=("parallel", "parallel"),
            vmem_limit_bytes=_vmem_limit(est)),
    )(q, k, v, attention_mask)


# ----------------------------------------------------------------------------
# Pure-JAX reference (mirrors the PyTorch forward, eval mode)
# ----------------------------------------------------------------------------
def _reference(hidden_states, attention_mask, w_qkv, b_qkv, num_heads):
    b_, s_, h_ = hidden_states.shape
    hd = h_ // num_heads
    mixed = (jnp.einsum("bsh,hk->bsk", hidden_states, w_qkv)
             + b_qkv.reshape(1, 1, 3 * h_))
    q, k, v = jnp.split(mixed, 3, axis=-1)

    def heads(t):
        return t.reshape(b_, s_, num_heads, hd).transpose(0, 2, 1, 3)

    q, k, v = heads(q), heads(k), heads(v)
    nf = math.sqrt(math.sqrt(hd))
    scores = jnp.einsum("bnqd,bnkd->bnqk", q / nf, k / nf) + attention_mask
    probs = jax.nn.softmax(scores, axis=-1)
    ctx = jnp.einsum("bnqk,bnkd->bnqd", probs, v)
    return ctx.transpose(0, 2, 1, 3).reshape(b_, s_, h_)


if __name__ == "__main__":
    # Small config: b=2, s=8, h=32, n=4 heads (hn=8), world_size=1.
    B, S, H, N = 2, 8, 32, 4
    key = jax.random.PRNGKey(0)
    k_x, k_w, k_b = jax.random.split(key, 3)

    hidden_states = jax.random.normal(k_x, (B, S, H), dtype=jnp.float32)

    # xavier_normal_-style QKV weight; non-zero bias to exercise the bias add.
    xavier_std = math.sqrt(2.0 / (H + 3 * H))
    w_qkv = xavier_std * jax.random.normal(k_w, (H, 3 * H), dtype=jnp.float32)
    b_qkv = 0.1 * jax.random.normal(k_b, (1, 3 * H), dtype=jnp.float32)

    # Additive key-padding mask: batch 1 masks out its last two key positions.
    key_valid = jnp.ones((B, S), dtype=jnp.float32).at[1, -2:].set(0.0)
    mask_bias = (1.0 - key_valid)[:, None, None, :] * (-10000.0)      # (B,1,1,S)
    mask_dense = jnp.broadcast_to(mask_bias, (B, 1, S, S)).astype(jnp.float32)

    ref = _reference(hidden_states, mask_dense, w_qkv, b_qkv, N)

    # 1) exactness check: f32 compute path, dense (B,1,S,S) mask.
    out_f32 = bert_parallel_self_attention(hidden_states, mask_dense, w_qkv,
                                           b_qkv, N,
                                           compute_dtype=jnp.float32)
    out_f32 = jax.block_until_ready(out_f32)
    assert out_f32.shape == (B, S, H)
    assert jnp.allclose(out_f32, ref, atol=1e-4, rtol=1e-4), \
        "f32 kernel mismatch vs reference"

    # 2) performance path: bf16 matmul operands, compact (B,1,1,S) mask.
    out_bf16 = bert_parallel_self_attention(hidden_states, mask_bias, w_qkv,
                                            b_qkv, N,
                                            compute_dtype=jnp.bfloat16)
    out_bf16 = jax.block_until_ready(out_bf16)
    assert out_bf16.shape == (B, S, H)
    assert jnp.allclose(out_bf16, ref, atol=3e-2, rtol=3e-2), \
        "bf16 kernel mismatch vs reference"

    print("KERNEL_OK")
</pallas_src>

<mosaic_0001>
module attributes {stable_mosaic.version = 11 : i64} {
  func.func @_qkv_proj_kernel(%arg0: i32, %arg1: memref<16x32xf32, #tpu.memory_space<vmem>>, %arg2: memref<32x96xf32, #tpu.memory_space<vmem>>, %arg3: memref<1x96xf32, #tpu.memory_space<vmem>>, %arg4: memref<16x96xf32, #tpu.memory_space<vmem>>) attributes {dimension_semantics = [#tpu.dimension_semantics<parallel>], iteration_bounds = array<i64: 1>, scalar_prefetch = 0 : i64, scratch_operands = 0 : i64, tpu.core_type = #tpu.core_type<tc>, window_params = [{transform_indices = @transform_0, window_bounds = array<i64: 16, 32>}, {pipeline_mode = #tpu.pipeline_mode<synchronous>, transform_indices = @transform_1, window_bounds = array<i64: 32, 96>}, {pipeline_mode = #tpu.pipeline_mode<synchronous>, transform_indices = @transform_2, window_bounds = array<i64: 1, 96>}, {transform_indices = @transform_3, window_bounds = array<i64: 16, 96>}]} {
    %c0 = arith.constant 0 : index
    %c0_0 = arith.constant 0 : index
    %0 = vector.load %arg1[%c0, %c0_0] : memref<16x32xf32, #tpu.memory_space<vmem>>, vector<16x32xf32>
    %c0_1 = arith.constant 0 : index
    %c0_2 = arith.constant 0 : index
    %1 = vector.load %arg2[%c0_1, %c0_2] : memref<32x96xf32, #tpu.memory_space<vmem>>, vector<32x96xf32>
    %cst = arith.constant dense<0.000000e+00> : vector<16x96xf32>
    %2 = tpu.matmul %0, %1, %cst {dimension_numbers = #tpu.dot_dimension_numbers<[1], [0], [0], [1], [0, 0, 1, 1], [], []>} : vector<16x32xf32>, vector<32x96xf32>, vector<16x96xf32> -> vector<16x96xf32>
    %c0_3 = arith.constant 0 : index
    %c0_4 = arith.constant 0 : index
    %3 = vector.load %arg3[%c0_3, %c0_4] : memref<1x96xf32, #tpu.memory_space<vmem>>, vector<1x96xf32>
    %4 = vector.broadcast %3 : vector<1x96xf32> to vector<16x96xf32>
    %5 = arith.addf %2, %4 : vector<16x96xf32>
    %c0_5 = arith.constant 0 : index
    %c0_6 = arith.constant 0 : index
    %6 = vector.load %arg4[%c0_5, %c0_6] : memref<16x96xf32, #tpu.memory_space<vmem>>, vector<16x96xf32>
    tpu.vector_store %arg4[%c0_5, %c0_6], %5 {strides = array<i32>} : memref<16x96xf32, #tpu.memory_space<vmem>>, vector<16x96xf32>,
    return
  }
  func.func @transform_0(%arg0: i32) -> (i32, i32) {
    %c0_i32 = arith.constant 0 : i32
    %c0_i32_0 = arith.constant 0 : i32
    return %arg0, %c0_i32 : i32, i32
  }
  func.func @transform_1(%arg0: i32) -> (i32, i32) {
    %c0_i32 = arith.constant 0 : i32
    %c0_i32_0 = arith.constant 0 : i32
    %c0_i32_1 = arith.constant 0 : i32
    return %c0_i32, %c0_i32_0 : i32, i32
  }
  func.func @transform_2(%arg0: i32) -> (i32, i32) {
    %c0_i32 = arith.constant 0 : i32
    %c0_i32_0 = arith.constant 0 : i32
    %c0_i32_1 = arith.constant 0 : i32
    return %c0_i32, %c0_i32_0 : i32, i32
  }
  func.func @transform_3(%arg0: i32) -> (i32, i32) {
    %c0_i32 = arith.constant 0 : i32
    %c0_i32_0 = arith.constant 0 : i32
    return %arg0, %c0_i32 : i32, i32
  }
}

</mosaic_0001>

<bundles_post_ra>
// kernel: tpu_custom_call.1
= control target key start
LH: loop header
LB: loop body
LE: loop exit
PB: predicated region body
PF: predicated region fallthrough
CT: control target
= control target key end

     0   :  { %8 = vsyncpa [#allocation3], 0  ;;  %s337_s0 = inlined_call_operand.hbm [shape: f32[16,32], index: 0, kind: input, shape index: {}]   ;;  %s338_s1 = inlined_call_operand.hbm [shape: f32[32,96], index: 1, kind: input, shape index: {}]   ;;  %s339_s2 = inlined_call_operand.vmem [shape: f32[1,96], index: 2, kind: input, shape index: {}]   ;;  %s340_s3 = inlined_call_operand.hbm [shape: f32[16,96], index: 3, kind: output, shape index: {}]  }
   0x1   :  { %9 = vsyncpa [#allocation6], 0 }
   0x2   :  { %10 = vsyncpa [#allocation4], 0  ;;  %s264_s12 = smov [#allocation2]   ;;  %s192_s16 = scalar_lea.hbm %s337_s0, 256 }
   0x3   :  { %s16_s13 = sshll.u32 %s264_s12, 4  ;;  %p193_p0 = scmp.ne.s32.totalorder %s337_s0, %s192_s16  ;;  %s17_s13 = int_to_ptr.vmem [resolvable:$true] %s16_s13 }
   0x4   :  { %p196_p1 = scmp.lt.u32.totalorder %s192_s16, %s337_s0 }
   0x6   :  { %p198_p2 = pnand %p196_p1, %p193_p0 }
   0x8   :  { %201 = shalt.err (!%p198_p2)
}
   0x9   :  { %s202_s21 = scalar_lea.vmem %s17_s13, 256  ;;  %p207_p4 = scmp.lt.s32.totalorder %s17_s13, %s17_s13 }
   0xa   :  { %p203_p3 = scmp.ne.s32.totalorder %s17_s13, %s202_s21  ;;  %p208_p5 = scmp.lt.s32.totalorder %s202_s21, %s202_s21 }
   0xc   :  { %p209_p6 = por %p208_p5, %p207_p4 }
   0xe   :  { %p210_p7 = pnand %p209_p6, %p203_p3 }
  0x10   :  { %213 = shalt.err (!%p210_p7)
}
  0x11   :  { %s265_s22 = smov 128   ;;  %s266_s23 = smov 8  }
  0x12   :  { %22 = dma.hbm_to_vmem [thread:$0]  %s337_s0, 256, %s17_s13, [#allocation3], %s265_s22, %s265_s22, %s266_s23  }
  0x13   :  { %s267_s26 = smov [#allocation5]   ;;  %s214_s30 = scalar_lea.hbm %s338_s1, 512 }
  0x14   :  { %s28_s27 = sshll.u32 %s267_s26, 4  ;;  %p215_p8 = scmp.ne.s32.totalorder %s338_s1, %s214_s30  ;;  %s29_s27 = int_to_ptr.vmem [resolvable:$true] %s28_s27 }
  0x15   :  { %p218_p9 = scmp.lt.u32.totalorder %s214_s30, %s338_s1 }
  0x17   :  { %p220_p10 = pnand %p218_p9, %p215_p8 }
  0x19   :  { %223 = shalt.err (!%p220_p10)
}
  0x1a   :  { %s224_s8 = scalar_lea.vmem %s29_s27, 512  ;;  %p229_p12 = scmp.lt.s32.totalorder %s29_s27, %s29_s27 }
  0x1b   :  { %p225_p11 = scmp.ne.s32.totalorder %s29_s27, %s224_s8  ;;  %p230_p13 = scmp.lt.s32.totalorder %s224_s8, %s224_s8 }
  0x1d   :  { %p231_p0 = por %p230_p13, %p229_p12 }
  0x1f   :  { %p232_p1 = pnand %p231_p0, %p225_p11 }
  0x21   :  { %235 = shalt.err (!%p232_p1)
}
  0x22   :  { %34 = dma.hbm_to_vmem [thread:$0]  %s338_s1, 512, %s29_s27, [#allocation6], %s265_s22, %s265_s22, %s266_s23  }
  0x23   :  { %258 = dma.done.wait [#allocation3], 256  }
  0x24   :  { %259 = vsyncadd [#allocation3], 4294967040 }
  0x25   :  { %260 = dma.done.wait [#allocation6], 512  }
  0x26   :  { %261 = vsyncadd [#allocation6], 4294966784  ;;  %vm56_vm0 = vcmask 261120   ;;  %v45_v0 = vld [vmem:[#allocation5] sm:$0xff]  ;;  %v46_v1 = vld [vmem:[#allocation5 + $0x8] sm:$0xff]  ;;  %s268_s11 = smov [#allocation7]  }
  0x27   :  { %v47_v2 = vld [vmem:[#allocation5 + $0x10] sm:$0xff]  ;;  %v179_v3 = vpack.c.bf16 %v46_v1, %v45_v0  ;;  %v48_v4 = vld [vmem:[#allocation5 + $0x18] sm:$0xff]  ;;  %s146_s12 = sshll.u32 %s268_s11, 4  ;;  %vm138_vm1 = vcmask 785408   ;;  %s147_s12 = int_to_ptr.vmem [resolvable:$true] %s146_s12 }
  0x28   :  { %v43_v5 = vld [vmem:[#allocation2] sm:$0xff]  ;;  %v183_v6 = vpack.c.bf16 %v48_v4, %v47_v2  ;;  %v44_v7 = vld [vmem:[#allocation2 + $0x8] sm:$0xff]  ;;  %s236_s13 = scalar_lea.vmem %s147_s12, 256  ;;  %p241_p3 = scmp.lt.s32.totalorder %s147_s12, %s147_s12 }
  0x29   :  { %176 = vmatprep.mubr.msk.f32.mxu0 %vm56_vm0, %v43_v5  ;;  %180 = vmatprep.subr.bf16.mxu0 %v179_v3  ;;  %v159_v8 = vld [vmem:[%s339_s2] ss:$0 sm:$0xff]  ;;  %p237_p2 = scmp.ne.s32.totalorder %s147_s12, %s236_s13  ;;  %p242_p4 = scmp.lt.s32.totalorder %s236_s13, %s236_s13 }
  0x2a   :  { %182 = vmatpush3.bf16.msra.mxu0 %v179_v3 }
  0x2b   :  { %184 = vmatprep.subr.bf16.mxu0 %v183_v6  ;;  %p243_p5 = por %p242_p4, %p241_p3 }
  0x2d   :  { %p244_p6 = pnand %p243_p5, %p237_p2 }
  0x2e   :  { %186 = vmatpush3.bf16.msra.mxu0 %v183_v6 }
  0x31   :  { %177 = vmatmul.mubr.msk.f32.vlgmr.msra.gmra.mrb[0].mxu0 %vm56_vm0, %v44_v7 }
 0x104   :  { %v178_v9 = vpop.f32.mrb[0].mxu0 }
 0x105   :  { %v135_v10 = vadd.f32 %v178_v9, %v159_v8  ;;  %v129_v11 = vpop.f32.mrb[1].mxu0 }
 0x106   :  { %v130_v12 = vadd.f32 %v159_v8, %v129_v11 }
 0x107   :  { %140 = vst.msk [vmem:[#allocation7 + $0x8] sm:$0xff] %vm138_vm1, %v135_v10 }
 0x108   :  { %139 = vst.msk [vmem:[#allocation7] sm:$0xff] %vm138_vm1, %v130_v12 }
 0x109   :  { %247 = shalt.err (!%p244_p6)
}
 0x10a   :  { %s248_s2 = scalar_lea.hbm %s340_s3, 256 }
 0x10b   :  { %p249_p7 = scmp.ne.s32.totalorder %s340_s3, %s248_s2  ;;  %p252_p8 = scmp.lt.u32.totalorder %s248_s2, %s340_s3 }
 0x10d   :  { %p254_p9 = pnand %p252_p8, %p249_p7 }
 0x10f   :  { %257 = shalt.err (!%p254_p9)
}
 0x110   :  { %152 = dma.vmem_to_hbm [thread:$0]  %s147_s12, 256, %s340_s3, [#allocation4], %s265_s22, %s265_s22, %s266_s23  }
 0x111   :  { %262 = dma.done.wait [#allocation4], 256  }
 0x112   :  { %263 = vsyncadd [#allocation4], 4294967040 }
 0x113   :  { %156 = vsyncpa [#allocation3], 1 }
 0x114   :  { %157 = vsyncpa [#allocation6], 1 }
 0x115   :  { %158 = vsyncpa [#allocation4], 1 }

</bundles_post_ra>
